<compile_context>
chip_gen: v5e
topology: v5e:2x2
jax: 0.10.0
libtpu: 0.0.40
codegen_flags: <defaults>
</compile_context>

<pallas_src>
import jax
import jax.numpy as jnp
from jax.experimental import pallas as pl
from jax.experimental.pallas import tpu as pltpu


# MXU-friendly padded N for the policy weight. Deliberately 128, not 256: the kernel
# is HBM-bound on every generation, so widening N only adds wasted work (v6e review).
NPAD = 128


def _round_up(x, m):
    return ((x + m - 1) // m) * m


def _choose_tile_r(R, H, itemsize):
    """Row tile sized so each streamed embedding block is ~4 MiB."""
    target_bytes = 4 << 20
    rows = max(8, (target_bytes // max(1, H * itemsize)) // 8 * 8)
    if rows >= R:
        # Single block spanning all rows (block dim == full array dim is always legal).
        return R
    tile_r = min(rows, 4096)
    # v7x megacore: prefer an even number of row tiles so both TensorCores stay busy.
    n = pl.cdiv(R, tile_r)
    if n > 1 and n % 2 == 1:
        cand = _round_up(pl.cdiv(R, n + 1), 8)
        if 8 <= cand < R and pl.cdiv(R, cand) % 2 == 0:
            tile_r = cand
    return tile_r


def _policy_kernel(emb_ref, wp_ref, bp_ref, out_ref):
    """One row-tile of the policy head.

    emb_ref : [tile_r, H]   embedding rows (bf16, fed straight to the MXU)
    wp_ref  : [H, NPAD]     policy weight, zero-padded to 128 lanes, bf16
    bp_ref  : [1, 2]        policy bias, f32
    out_ref : [tile_r, 2]   policy logits, f32 (real width — no padded write-back)
    """
    acc = jnp.dot(emb_ref[...], wp_ref[...], preferred_element_type=jnp.float32)
    nout = out_ref.shape[-1]
    out_ref[...] = acc[:, :nout] + bp_ref[...]


def _value_kernel(cls_ref, w1_ref, b1_ref, w2_ref, b2_ref, value_ref):
    """Value head on the CLS rows (tiny: B rows, run once as a single block).

    cls_ref   : [B, H]    CLS embeddings (bf16)
    w1_ref    : [H, 128]  value_head[0] weight (transposed vs torch), bf16
    b1_ref    : [1, 128]  f32
    w2_ref    : [128, 1]  value_head[2] weight (transposed), f32
    b2_ref    : [1, 1]    f32
    value_ref : [B, 1]    f32
    """
    h = jnp.dot(cls_ref[...], w1_ref[...], preferred_element_type=jnp.float32)
    h = jnp.maximum(h + b1_ref[...], 0.0)          # bias + ReLU in f32
    v = jnp.dot(h, w2_ref[...], preferred_element_type=jnp.float32) + b2_ref[...]
    value_ref[...] = v.astype(value_ref.dtype)


def _policy_head(emb_flat, wp_pad, bp, tile_r=None):
    """Row-tiled policy head: [R, H] (bf16) x [H, NPAD] -> [R, 2] (f32)."""
    R, H = emb_flat.shape
    if tile_r is None:
        tile_r = _choose_tile_r(R, H, emb_flat.dtype.itemsize)
    else:
        tile_r = R if tile_r >= R else max(8, (tile_r // 8) * 8)

    grid = (pl.cdiv(R, tile_r),)   # ragged last tile masked by Pallas — no jnp.pad copy
    return pl.pallas_call(
        _policy_kernel,
        out_shape=jax.ShapeDtypeStruct((R, 2), jnp.float32),
        grid=grid,
        in_specs=[
            # Streamed rows. If xprof ever shows exposed input DMA between steps,
            # pipeline_mode=pl.Buffered(3) here is the knob; default depth-2 is fine.
            pl.BlockSpec((tile_r, H), lambda i: (i, 0)),
            pl.BlockSpec((H, NPAD), lambda i: (0, 0)),   # resident weight
            pl.BlockSpec((1, 2), lambda i: (0, 0)),      # resident bias
        ],
        out_specs=pl.BlockSpec((tile_r, 2), lambda i: (i, 0)),
        compiler_params=pltpu.CompilerParams(
            dimension_semantics=("parallel",),           # megacore on v7x
            vmem_limit_bytes=32 * 1024 * 1024,           # > v5e's 16 MiB default, <= v7x budget
        ),
    )(emb_flat, wp_pad, bp)


def _value_head(cls, w1, b1, w2, b2):
    """Single-block value head on the [B, H] CLS rows."""
    B = cls.shape[0]
    vmem = pl.BlockSpec(memory_space=pltpu.MemorySpace.VMEM)
    return pl.pallas_call(
        _value_kernel,
        out_shape=jax.ShapeDtypeStruct((B, 1), jnp.float32),
        in_specs=[vmem] * 5,
        out_specs=vmem,
    )(cls, w1, b1, w2, b2)


def prepare_params(raw, compute_dtype=jnp.bfloat16):
    """One-time parameter prep (hoisted out of forward): pad/cast weights."""
    H = raw["wp"].shape[0]
    wp_pad = jnp.zeros((H, NPAD), compute_dtype).at[:, :2].set(
        raw["wp"].astype(compute_dtype))
    return dict(
        wp_pad=wp_pad,
        bp=raw["bp"].astype(jnp.float32).reshape(1, 2),
        w1=raw["w1"].astype(compute_dtype),
        b1=raw["b1"].astype(jnp.float32).reshape(1, 128),
        w2=raw["w2"].astype(jnp.float32),
        b2=raw["b2"].astype(jnp.float32).reshape(1, 1),
    )


def forward(embeddings, tokens, params, tile_r=None):
    """Mirrors DynamicPromptCompressionAgent.forward: (policy_logits, value, tokens)."""
    B, S, H = embeddings.shape
    if embeddings.dtype != jnp.bfloat16:
        # TODO(synk): the encoder should emit bf16 directly; cast here as a guard only.
        embeddings = embeddings.astype(jnp.bfloat16)

    emb_flat = embeddings.reshape(B * S, H)
    policy = _policy_head(emb_flat, params["wp_pad"], params["bp"], tile_r=tile_r)
    policy_logits = policy.reshape(B, S, 2)          # free metadata reshape

    cls = embeddings[:, 0, :]                        # bf16 CLS rows
    value = _value_head(cls, params["w1"], params["b1"], params["w2"], params["b2"])
    return policy_logits, value, tokens


def init_params(key, hidden_size):
    """Deterministic synthetic parameters (shapes from the module __init__)."""
    k = jax.random.split(key, 6)
    # Stored as [in_features, out_features] (transposed relative to torch nn.Linear).
    wp = jax.random.normal(k[0], (hidden_size, 2), jnp.float32) * 0.02
    bp = jax.random.normal(k[1], (1, 2), jnp.float32) * 0.02
    w1 = jax.random.normal(k[2], (hidden_size, 128), jnp.float32) * 0.02
    b1 = jax.random.normal(k[3], (1, 128), jnp.float32) * 0.02
    w2 = jax.random.normal(k[4], (128, 1), jnp.float32) * 0.02
    b2 = jax.random.normal(k[5], (1, 1), jnp.float32) * 0.02
    return dict(wp=wp, bp=bp, w1=w1, b1=b1, w2=w2, b2=b2)


if __name__ == "__main__":
    key = jax.random.PRNGKey(0)
    k_emb, k_tok, k_par = jax.random.split(key, 3)

    # Small synthetic "encoder output": batch=2, seq=8, hidden=32, emitted in bf16.
    B, S, H = 2, 8, 32
    embeddings = jax.random.normal(k_emb, (B, S, H), jnp.float32).astype(jnp.bfloat16)
    tokens = jax.random.randint(k_tok, (B, S), 0, 250002, jnp.int32)  # synthetic input_ids

    raw_params = init_params(k_par, H)
    params = prepare_params(raw_params)               # one-time pad/cast, not per call

    policy_logits, value, toks = forward(embeddings, tokens, params)
    policy_logits = jax.block_until_ready(policy_logits)
    value = jax.block_until_ready(value)

    # Reference check in plain JAX with the same operand rounding as the kernels.
    emb32 = embeddings.astype(jnp.float32)
    wp32 = raw_params["wp"].astype(jnp.bfloat16).astype(jnp.float32)
    ref_policy = jnp.einsum("bsh,hk->bsk", emb32, wp32) + raw_params["bp"]
    cls32 = emb32[:, 0, :]
    w1_32 = raw_params["w1"].astype(jnp.bfloat16).astype(jnp.float32)
    ref_h = jnp.maximum(cls32 @ w1_32 + raw_params["b1"], 0.0)
    ref_value = ref_h @ raw_params["w2"] + raw_params["b2"]

    assert policy_logits.shape == (B, S, 2)
    assert value.shape == (B, 1)
    assert toks.shape == (B, S)
    assert jnp.allclose(policy_logits, ref_policy, atol=1e-2, rtol=1e-2)
    assert jnp.allclose(value, ref_value, atol=1e-2, rtol=1e-2)

    print("KERNEL_OK")
</pallas_src>

<mosaic_0001>
module attributes {stable_mosaic.version = 11 : i64} {
  func.func @_policy_kernel(%arg0: i32, %arg1: memref<16x32xbf16, #tpu.memory_space<vmem>>, %arg2: memref<32x128xbf16, #tpu.memory_space<vmem>>, %arg3: memref<1x2xf32, #tpu.memory_space<vmem>>, %arg4: memref<16x2xf32, #tpu.memory_space<vmem>>) attributes {dimension_semantics = [#tpu.dimension_semantics<parallel>], iteration_bounds = array<i64: 1>, scalar_prefetch = 0 : i64, scratch_operands = 0 : i64, tpu.core_type = #tpu.core_type<tc>, window_params = [{transform_indices = @transform_0, window_bounds = array<i64: 16, 32>}, {pipeline_mode = #tpu.pipeline_mode<synchronous>, transform_indices = @transform_1, window_bounds = array<i64: 32, 128>}, {pipeline_mode = #tpu.pipeline_mode<synchronous>, transform_indices = @transform_2, window_bounds = array<i64: 1, 2>}, {transform_indices = @transform_3, window_bounds = array<i64: 16, 2>}]} {
    %c0 = arith.constant 0 : index
    %c0_0 = arith.constant 0 : index
    %0 = vector.load %arg1[%c0, %c0_0] : memref<16x32xbf16, #tpu.memory_space<vmem>>, vector<16x32xbf16>
    %c0_1 = arith.constant 0 : index
    %c0_2 = arith.constant 0 : index
    %1 = vector.load %arg2[%c0_1, %c0_2] : memref<32x128xbf16, #tpu.memory_space<vmem>>, vector<32x128xbf16>
    %cst = arith.constant dense<0.000000e+00> : vector<16x128xf32>
    %2 = tpu.matmul %0, %1, %cst {dimension_numbers = #tpu.dot_dimension_numbers<[1], [0], [0], [1], [0, 0, 1, 1], [], []>} : vector<16x32xbf16>, vector<32x128xbf16>, vector<16x128xf32> -> vector<16x128xf32>
    %3 = vector.extract_strided_slice %2 {offsets = [0, 0], sizes = [16, 2], strides = [1, 1]} : vector<16x128xf32> to vector<16x2xf32>
    %c0_3 = arith.constant 0 : index
    %c0_4 = arith.constant 0 : index
    %4 = vector.load %arg3[%c0_3, %c0_4] : memref<1x2xf32, #tpu.memory_space<vmem>>, vector<1x2xf32>
    %5 = vector.broadcast %4 : vector<1x2xf32> to vector<16x2xf32>
    %6 = arith.addf %3, %5 : vector<16x2xf32>
    %c0_5 = arith.constant 0 : index
    %c0_6 = arith.constant 0 : index
    %7 = vector.load %arg4[%c0_5, %c0_6] : memref<16x2xf32, #tpu.memory_space<vmem>>, vector<16x2xf32>
    tpu.vector_store %arg4[%c0_5, %c0_6], %6 {strides = array<i32>} : memref<16x2xf32, #tpu.memory_space<vmem>>, vector<16x2xf32>,
    return
  }
  func.func @transform_0(%arg0: i32) -> (i32, i32) {
    %c0_i32 = arith.constant 0 : i32
    %c0_i32_0 = arith.constant 0 : i32
    return %arg0, %c0_i32 : i32, i32
  }
  func.func @transform_1(%arg0: i32) -> (i32, i32) {
    %c0_i32 = arith.constant 0 : i32
    %c0_i32_0 = arith.constant 0 : i32
    %c0_i32_1 = arith.constant 0 : i32
    return %c0_i32, %c0_i32_0 : i32, i32
  }
  func.func @transform_2(%arg0: i32) -> (i32, i32) {
    %c0_i32 = arith.constant 0 : i32
    %c0_i32_0 = arith.constant 0 : i32
    %c0_i32_1 = arith.constant 0 : i32
    return %c0_i32, %c0_i32_0 : i32, i32
  }
  func.func @transform_3(%arg0: i32) -> (i32, i32) {
    %c0_i32 = arith.constant 0 : i32
    %c0_i32_0 = arith.constant 0 : i32
    return %arg0, %c0_i32 : i32, i32
  }
}

</mosaic_0001>

<bundles_post_ra>
// kernel: tpu_custom_call.1
= control target key start
LH: loop header
LB: loop body
LE: loop exit
PB: predicated region body
PF: predicated region fallthrough
CT: control target
= control target key end

     0   :  { %8 = vsyncpa [#allocation3], 0  ;;  %s215_s0 = inlined_call_operand.hbm [shape: bf16[16,32], index: 0, kind: input, shape index: {}]   ;;  %s216_s1 = inlined_call_operand.hbm [shape: bf16[32,128], index: 1, kind: input, shape index: {}]   ;;  %s217_s2 = inlined_call_operand.vmem [shape: f32[1,2], index: 2, kind: input, shape index: {}]   ;;  %s218_s3 = inlined_call_operand.vmem [shape: f32[16,2], index: 3, kind: output, shape index: {}]  }
   0x1   :  { %s14_s14 = sshll.u32 %s215_s0, 4  ;;  %s15_s14 = int_to_ptr.hbm [resolvable:$true] %s14_s14 }
   0x2   :  { %9 = vsyncpa [#allocation5], 0  ;;  %s176_s15 = smov [#allocation2]   ;;  %s27_s19 = sshll.u32 %s216_s1, 4  ;;  %s28_s19 = int_to_ptr.hbm [resolvable:$true] %s27_s19 }
   0x3   :  { %s16_s16 = sshll.u32 %s176_s15, 4  ;;  %s177_s20 = smov 64   ;;  %s17_s16 = int_to_ptr.vmem [resolvable:$true] %s16_s16 }
   0x4   :  { %s178_s21 = smov 4   ;;  %s179_s22 = smov [#allocation4]  }
   0x5   :  { %22 = dma.hbm_to_vmem [thread:$0]  %s15_s14, 128, %s17_s16, [#allocation3], %s177_s20, %s177_s20, %s178_s21  }
   0x6   :  { %s29_s23 = sshll.u32 %s179_s22, 4  ;;  %s30_s23 = int_to_ptr.vmem [resolvable:$true] %s29_s23 }
   0x7   :  { %35 = dma.hbm_to_vmem [thread:$0]  %s28_s19, 256, %s30_s23, [#allocation5], %s177_s20, %s177_s20, %s178_s21  }
   0x8   :  { %172 = dma.done.wait [#allocation3], 128  }
   0x9   :  { %173 = vsyncadd [#allocation3], 4294967168 }
   0xa   :  { %174 = dma.done.wait [#allocation5], 256  }
   0xb   :  { %175 = vsyncadd [#allocation5], 4294967040  ;;  %v118_v0 = vld [vmem:[#allocation4 + $0x8] sm:$0xff]  ;;  %v117_v1 = vld [vmem:[#allocation4] sm:$0xff]  ;;  %vm70_vm0 = vcmask 261120   ;;  %vm94_vm1 = vcmask 15360  }
   0xc   :  { %80 = vmatpush.bf16.msra.mxu0 %v118_v0  ;;  %v116_v2 = vld [vmem:[#allocation2] sm:$0xff] }
   0xd   :  { %v123_v3 = vld [vmem:[%s217_s2] ss:$0 sm:$0xff] }
  0x10   :  { %81 = vmatpush.bf16.msra.mxu0 %v117_v1 }
  0x13   :  { %115 = vmatmul.msk.bf16.vlgmr.msra.gmra.mxu0 %vm70_vm0, %v116_v2 }
  0x90   :  { %v83_v4 = vpop.f32.mrf.mxu0 }
  0x91   :  { %v92_v5 = vadd.f32 %v123_v3, %v83_v4 }
  0x93   :  { %95 = vst.msk [vmem:[%s218_s3] sm:$0xff] %vm94_vm1, %v92_v5 }
  0x98   :  { %v85_v6 = vpop.f32.mrf.mxu0 }
  0x99   :  { %v93_v7 = vadd.f32 %v123_v3, %v85_v6 }
  0x9b   :  { %96 = vst.msk [vmem:[%s218_s3 + $0x8] sm:$0xff] %vm94_vm1, %v93_v7 }
  0x9c   :  { %101 = vsyncpa [#allocation3], 1 }
  0x9d   :  { %102 = vsyncpa [#allocation5], 1 }

</bundles_post_ra>
